<compile_context>
chip_gen: v5e
topology: v5e:2x2
jax: 0.10.0
libtpu: 0.0.40
codegen_flags: <defaults>
</compile_context>

<pallas_src>
import functools

import jax
import jax.numpy as jnp
from jax.experimental import pallas as pl
from jax.experimental.pallas import tpu as pltpu

_ROW_TILE = 128   # row tile for the gridded (large-batch) path
_LANES = 128      # padded feature width (hidden and n_class)


def _mlp_kernel(x_ref, w1_ref, w2_ref, w3_ref, vec_ref, o_ref):
    # vec_ref rows: 0 = folded shift for layer 1, 1 = folded shift for layer 2,
    #               2 = fc3 bias. All zero-padded to 128 lanes.
    vec = vec_ref[...]                      # (8, 128) f32
    t1 = vec[0:1, :]
    t2 = vec[1:2, :]
    b3 = vec[2:3, :]

    x = x_ref[...]                          # (tm, 128) bf16

    # fc1 (BN scale folded into w1) -> shift -> relu    (Dropout2d = identity, eval)
    h1 = jnp.dot(x, w1_ref[...], preferred_element_type=jnp.float32) + t1
    h1 = jnp.maximum(h1, 0.0)

    # fc2 (BN scale folded into w2) -> shift -> relu
    h2 = jnp.dot(h1.astype(jnp.bfloat16), w2_ref[...],
                 preferred_element_type=jnp.float32) + t2
    h2 = jnp.maximum(h2, 0.0)

    # fc3 + bias  (lane-dense 128-wide output; real classes are the first n_class)
    o_ref[...] = jnp.dot(h2.astype(jnp.bfloat16), w3_ref[...],
                         preferred_element_type=jnp.float32) + b3


def data_classifier_digits_forward(x, params):
    """x: (N, 128) float32. Returns (N, n_class) float32."""
    w1, w2, w3, vecs = params["w1"], params["w2"], params["w3"], params["vecs"]
    n_class = params["n_class"]
    n = x.shape[0]
    xb = x.astype(jnp.bfloat16)             # halves x HBM traffic; matmul in bf16

    if n % _ROW_TILE == 0 and n >= _ROW_TILE:
        # Large batch: tile rows, parallel grid axis (uses both TCs on v7x).
        full = lambda i: (0, 0)
        out = pl.pallas_call(
            _mlp_kernel,
            out_shape=jax.ShapeDtypeStruct((n, _LANES), jnp.float32),
            grid=(n // _ROW_TILE,),
            in_specs=[
                pl.BlockSpec((_ROW_TILE, 128), lambda i: (i, 0)),   # x rows
                pl.BlockSpec((128, _LANES), full),                  # w1 (resident)
                pl.BlockSpec((_LANES, _LANES), full),               # w2 (resident)
                pl.BlockSpec((_LANES, _LANES), full),               # w3 (resident)
                pl.BlockSpec((8, _LANES), full),                    # packed vectors
            ],
            out_specs=pl.BlockSpec((_ROW_TILE, _LANES), lambda i: (i, 0)),
            compiler_params=pltpu.CompilerParams(
                dimension_semantics=("parallel",)),
        )(xb, w1, w2, w3, vecs)
    else:
        # Small batch: single full-array block, no grid, no scratch.
        vmem = pl.BlockSpec(memory_space=pltpu.MemorySpace.VMEM)
        out = pl.pallas_call(
            _mlp_kernel,
            out_shape=jax.ShapeDtypeStruct((n, _LANES), jnp.float32),
            in_specs=[vmem] * 5,
            out_specs=vmem,
        )(xb, w1, w2, w3, vecs)

    return out[:, :n_class]


def make_params(key, n_class=10, input_size=128, hidden=100, eps=1e-5):
    """Synthetic parameters matching the PyTorch module's shapes, pre-folded.

    PyTorch: fc1 (100,128), bn1(100), fc2 (100,100), bn2(100), fc3 (n_class,100).
    Here weights are stored transposed (x @ W), BN (eval) is folded into the
    weight columns (scale) and a per-feature shift, everything zero-padded to
    128 lanes, and matmul operands cast to bf16.
    """
    ks = jax.random.split(key, 14)

    def lin(kw, kb, fan_in, fan_out):
        bound = 1.0 / jnp.sqrt(fan_in)
        w = jax.random.uniform(kw, (fan_in, fan_out), jnp.float32, -bound, bound)
        b = jax.random.uniform(kb, (fan_out,), jnp.float32, -bound, bound)
        return w, b

    w1, b1 = lin(ks[0], ks[1], input_size, hidden)
    w2, b2 = lin(ks[2], ks[3], hidden, hidden)
    w3, b3 = lin(ks[4], ks[5], hidden, n_class)

    def bn(kg, kb, km, kv, dim):
        gamma = 1.0 + 0.1 * jax.random.normal(kg, (dim,), jnp.float32)
        beta = 0.1 * jax.random.normal(kb, (dim,), jnp.float32)
        mean = 0.1 * jax.random.normal(km, (dim,), jnp.float32)
        var = jnp.abs(jax.random.normal(kv, (dim,), jnp.float32)) + 0.5
        return gamma, beta, mean, var

    g1, be1, m1, v1 = bn(ks[6], ks[7], ks[8], ks[9], hidden)
    g2, be2, m2, v2 = bn(ks[10], ks[11], ks[12], ks[13], hidden)

    # Fold BN (eval) + Linear bias: bn(Wx + b) = x @ (W * s) + ((b - mean) * s + beta)
    s1 = g1 / jnp.sqrt(v1 + eps)
    t1 = (b1 - m1) * s1 + be1
    s2 = g2 / jnp.sqrt(v2 + eps)
    t2 = (b2 - m2) * s2 + be2
    w1f = w1 * s1[None, :]
    w2f = w2 * s2[None, :]

    # Zero-pad feature dims to 128 lanes (padded lanes are inert: shift = 0).
    def pad2(w, rows, cols):
        out = jnp.zeros((rows, cols), jnp.float32)
        return out.at[:w.shape[0], :w.shape[1]].set(w)

    w1p = pad2(w1f, input_size, _LANES)
    w2p = pad2(w2f, _LANES, _LANES)
    w3p = pad2(w3, _LANES, _LANES)

    vecs = jnp.zeros((8, _LANES), jnp.float32)
    vecs = vecs.at[0, :hidden].set(t1)
    vecs = vecs.at[1, :hidden].set(t2)
    vecs = vecs.at[2, :n_class].set(b3)

    return {
        "w1": w1p.astype(jnp.bfloat16),
        "w2": w2p.astype(jnp.bfloat16),
        "w3": w3p.astype(jnp.bfloat16),
        "vecs": vecs,
        "n_class": n_class,
        # raw (unfolded, unpadded) pieces for the pure-JAX f32 reference
        "_raw": (w1, b1, g1, be1, m1, v1, w2, b2, g2, be2, m2, v2, w3, b3, eps),
    }


def reference_forward(x, params):
    (w1, b1, g1, be1, m1, v1, w2, b2, g2, be2, m2, v2, w3, b3, eps) = params["_raw"]
    h = x @ w1 + b1
    h = (h - m1) / jnp.sqrt(v1 + eps) * g1 + be1
    h = jnp.maximum(h, 0.0)            # Dropout2d: identity in eval mode
    h = h @ w2 + b2
    h = (h - m2) / jnp.sqrt(v2 + eps) * g2 + be2
    h = jnp.maximum(h, 0.0)
    return h @ w3 + b3


if __name__ == "__main__":
    key = jax.random.PRNGKey(0)
    kx, kp, kx2 = jax.random.split(key, 3)

    N, INPUT, N_CLASS = 8, 128, 10      # input_size = 64 * 2 = 128 per the module
    params = make_params(kp, n_class=N_CLASS, input_size=INPUT)

    # Small batch -> gridless single-block path.
    x = jax.random.normal(kx, (N, INPUT), jnp.float32)
    out = jax.block_until_ready(data_classifier_digits_forward(x, params))
    ref = reference_forward(x, params)
    assert out.shape == (N, N_CLASS)
    assert jnp.allclose(out, ref, atol=5e-2, rtol=5e-2), "small-batch mismatch"

    # Larger batch -> row-tiled parallel-grid path (amortizes launch/DMA overhead).
    N2 = 512
    x2 = jax.random.normal(kx2, (N2, INPUT), jnp.float32)
    out2 = jax.block_until_ready(data_classifier_digits_forward(x2, params))
    ref2 = reference_forward(x2, params)
    assert out2.shape == (N2, N_CLASS)
    assert jnp.allclose(out2, ref2, atol=5e-2, rtol=5e-2), "large-batch mismatch"

    print("KERNEL_OK")
</pallas_src>

<mosaic_0001>
module attributes {stable_mosaic.version = 11 : i64} {
  func.func @_mlp_kernel(%arg0: memref<8x128xbf16, #tpu.memory_space<vmem>>, %arg1: memref<128x128xbf16, #tpu.memory_space<vmem>>, %arg2: memref<128x128xbf16, #tpu.memory_space<vmem>>, %arg3: memref<128x128xbf16, #tpu.memory_space<vmem>>, %arg4: memref<8x128xf32, #tpu.memory_space<vmem>>, %arg5: memref<8x128xf32, #tpu.memory_space<vmem>>) attributes {dimension_semantics = [], scalar_prefetch = 0 : i64, scratch_operands = 0 : i64, tpu.core_type = #tpu.core_type<tc>} {
    %c0 = arith.constant 0 : index
    %c0_0 = arith.constant 0 : index
    %0 = vector.load %arg4[%c0, %c0_0] : memref<8x128xf32, #tpu.memory_space<vmem>>, vector<8x128xf32>
    %1 = vector.extract_strided_slice %0 {offsets = [0, 0], sizes = [1, 128], strides = [1, 1]} : vector<8x128xf32> to vector<1x128xf32>
    %2 = vector.extract_strided_slice %0 {offsets = [1, 0], sizes = [1, 128], strides = [1, 1]} : vector<8x128xf32> to vector<1x128xf32>
    %3 = vector.extract_strided_slice %0 {offsets = [2, 0], sizes = [1, 128], strides = [1, 1]} : vector<8x128xf32> to vector<1x128xf32>
    %c0_1 = arith.constant 0 : index
    %c0_2 = arith.constant 0 : index
    %4 = vector.load %arg0[%c0_1, %c0_2] : memref<8x128xbf16, #tpu.memory_space<vmem>>, vector<8x128xbf16>
    %c0_3 = arith.constant 0 : index
    %c0_4 = arith.constant 0 : index
    %5 = vector.load %arg1[%c0_3, %c0_4] : memref<128x128xbf16, #tpu.memory_space<vmem>>, vector<128x128xbf16>
    %cst = arith.constant dense<0.000000e+00> : vector<8x128xf32>
    %6 = tpu.matmul %4, %5, %cst {dimension_numbers = #tpu.dot_dimension_numbers<[1], [0], [0], [1], [0, 0, 1, 1], [], []>} : vector<8x128xbf16>, vector<128x128xbf16>, vector<8x128xf32> -> vector<8x128xf32>
    %7 = vector.broadcast %1 : vector<1x128xf32> to vector<8x128xf32>
    %8 = arith.addf %6, %7 : vector<8x128xf32>
    %cst_5 = arith.constant 0.000000e+00 : f32
    %9 = vector.broadcast %cst_5 : f32 to vector<8x128xf32>
    %10 = arith.maximumf %8, %9 : vector<8x128xf32>
    %11 = arith.truncf %10 : vector<8x128xf32> to vector<8x128xbf16>
    %c0_6 = arith.constant 0 : index
    %c0_7 = arith.constant 0 : index
    %12 = vector.load %arg2[%c0_6, %c0_7] : memref<128x128xbf16, #tpu.memory_space<vmem>>, vector<128x128xbf16>
    %cst_8 = arith.constant dense<0.000000e+00> : vector<8x128xf32>
    %13 = tpu.matmul %11, %12, %cst_8 {dimension_numbers = #tpu.dot_dimension_numbers<[1], [0], [0], [1], [0, 0, 1, 1], [], []>} : vector<8x128xbf16>, vector<128x128xbf16>, vector<8x128xf32> -> vector<8x128xf32>
    %14 = vector.broadcast %2 : vector<1x128xf32> to vector<8x128xf32>
    %15 = arith.addf %13, %14 : vector<8x128xf32>
    %cst_9 = arith.constant 0.000000e+00 : f32
    %16 = vector.broadcast %cst_9 : f32 to vector<8x128xf32>
    %17 = arith.maximumf %15, %16 : vector<8x128xf32>
    %18 = arith.truncf %17 : vector<8x128xf32> to vector<8x128xbf16>
    %c0_10 = arith.constant 0 : index
    %c0_11 = arith.constant 0 : index
    %19 = vector.load %arg3[%c0_10, %c0_11] : memref<128x128xbf16, #tpu.memory_space<vmem>>, vector<128x128xbf16>
    %cst_12 = arith.constant dense<0.000000e+00> : vector<8x128xf32>
    %20 = tpu.matmul %18, %19, %cst_12 {dimension_numbers = #tpu.dot_dimension_numbers<[1], [0], [0], [1], [0, 0, 1, 1], [], []>} : vector<8x128xbf16>, vector<128x128xbf16>, vector<8x128xf32> -> vector<8x128xf32>
    %21 = vector.broadcast %3 : vector<1x128xf32> to vector<8x128xf32>
    %22 = arith.addf %20, %21 : vector<8x128xf32>
    %c0_13 = arith.constant 0 : index
    %c0_14 = arith.constant 0 : index
    %23 = vector.load %arg5[%c0_13, %c0_14] : memref<8x128xf32, #tpu.memory_space<vmem>>, vector<8x128xf32>
    tpu.vector_store %arg5[%c0_13, %c0_14], %22 {strides = array<i32>} : memref<8x128xf32, #tpu.memory_space<vmem>>, vector<8x128xf32>,
    return
  }
}

</mosaic_0001>

<bundles_post_ra>
// kernel: tpu_custom_call.1
= control target key start
LH: loop header
LB: loop body
LE: loop exit
PB: predicated region body
PF: predicated region fallthrough
CT: control target
= control target key end

     0   :  { %10 = vsyncpa [#allocation3], 0  ;;  %s691_s0 = inlined_call_operand.hbm [shape: bf16[8,128], index: 0, kind: input, shape index: {}]   ;;  %s692_s1 = inlined_call_operand.hbm [shape: bf16[128,128], index: 1, kind: input, shape index: {}]   ;;  %s693_s2 = inlined_call_operand.hbm [shape: bf16[128,128], index: 2, kind: input, shape index: {}]   ;;  %s694_s3 = inlined_call_operand.hbm [shape: bf16[128,128], index: 3, kind: input, shape index: {}]   ;;  %s695_s4 = inlined_call_operand.hbm [shape: f32[8,128], index: 4, kind: input, shape index: {}]   ;;  %s696_s5 = inlined_call_operand.hbm [shape: f32[8,128], index: 5, kind: output, shape index: {}]  }
   0x1   :  { %11 = vsyncpa [#allocation6], 0 }
   0x2   :  { %12 = vsyncpa [#allocation9], 0  ;;  %s29_s20 = sshll.u32 %s692_s1, 4  ;;  %s30_s20 = int_to_ptr.hbm [resolvable:$true] %s29_s20 }
   0x3   :  { %13 = vsyncpa [#allocation4], 0  ;;  %s635_s21 = smov [#allocation5]   ;;  %s55_s25 = sshll.u32 %s694_s3, 4  ;;  %s56_s25 = int_to_ptr.hbm [resolvable:$true] %s55_s25 }
   0x4   :  { %s31_s22 = sshll.u32 %s635_s21, 4  ;;  %s636_s26 = smov 64   ;;  %s32_s22 = int_to_ptr.vmem [resolvable:$true] %s31_s22 }
   0x5   :  { %s637_s27 = smov 4   ;;  %s638_s28 = smov [#allocation8]  }
   0x6   :  { %37 = dma.hbm_to_vmem [thread:$0]  %s30_s20, 1024, %s32_s22, [#allocation6], %s636_s26, %s636_s26, %s637_s27  }
   0x7   :  { %s57_s29 = sshll.u32 %s638_s28, 4  ;;  %s19_s7 = sshll.u32 %s691_s0, 4  ;;  %s58_s29 = int_to_ptr.vmem [resolvable:$true] %s57_s29  ;;  %s20_s7 = int_to_ptr.hbm [resolvable:$true] %s19_s7 }
   0x8   :  { %63 = dma.hbm_to_vmem [thread:$0]  %s56_s25, 1024, %s58_s29, [#allocation9], %s636_s26, %s636_s26, %s637_s27  }
   0x9   :  { %s42_s9 = sshll.u32 %s693_s2, 4  ;;  %s639_s10 = smov [#allocation2]   ;;  %s43_s9 = int_to_ptr.hbm [resolvable:$true] %s42_s9 }
   0xa   :  { %s21_s11 = sshll.u32 %s639_s10, 4  ;;  %s640_s3 = smov [#allocation7]   ;;  %s22_s11 = int_to_ptr.vmem [resolvable:$true] %s21_s11 }
   0xb   :  { %24 = dma.hbm_to_vmem [thread:$0]  %s20_s7, 64, %s22_s11, [#allocation3]  }
   0xc   :  { %s44_s12 = sshll.u32 %s640_s3, 4  ;;  %s69_s15 = sshll.u32 %s695_s4, 4  ;;  %s45_s12 = int_to_ptr.vmem [resolvable:$true] %s44_s12  ;;  %s70_s15 = int_to_ptr.hbm [resolvable:$true] %s69_s15 }
   0xd   :  { %50 = dma.hbm_to_vmem [thread:$0]  %s43_s9, 1024, %s45_s12, [#allocation6], %s636_s26, %s636_s26, %s637_s27  }
   0xe   :  { %s641_s0 = smov [#allocation10]  }
   0xf   :  { %s71_s16 = sshll.u32 %s641_s0, 4  ;;  %s72_s16 = int_to_ptr.vmem [resolvable:$true] %s71_s16 }
  0x10   :  { %74 = dma.hbm_to_vmem [thread:$0]  %s70_s15, 128, %s72_s16, [#allocation9]  }
  0x11   :  { %627 = dma.done.wait [#allocation3], 64  }
  0x12   :  { %628 = vsyncadd [#allocation3], 4294967232 }
  0x13   :  { %629 = dma.done.wait [#allocation6], 2048  }
  0x14   :  { %630 = vsyncadd [#allocation6], 4294965248 }
  0x15   :  { %631 = dma.done.wait [#allocation9], 1152  }
  0x16   :  { %632 = vsyncadd [#allocation9], 4294966144  ;;  %v458_v0 = vld [vmem:[#allocation5 + $0x38] sm:$0xff]  ;;  %v457_v1 = vld [vmem:[#allocation5 + $0x30] sm:$0xff]  ;;  %s642_s2 = smov [#allocation11]   ;;  %s343_s19 = sshll.u32 %s696_s5, 4  ;;  %s344_s19 = int_to_ptr.hbm [resolvable:$true] %s343_s19 }
  0x17   :  { %162 = vmatpush.bf16.msra.mxu0 %v458_v0  ;;  %v466_v2 = vld [vmem:[#allocation7 + $0x38] sm:$0xff]  ;;  %v465_v3 = vld [vmem:[#allocation7 + $0x30] sm:$0xff]  ;;  %v456_v4 = vld [vmem:[#allocation5 + $0x28] sm:$0xff]  ;;  %s341_s4 = sshll.u32 %s642_s2, 4  ;;  %s342_s4 = int_to_ptr.vmem [resolvable:$true] %s341_s4 }
  0x18   :  { %242 = vmatpush.bf16.msra.mxu1 %v466_v2  ;;  %v464_v5 = vld [vmem:[#allocation7 + $0x28] sm:$0xff]  ;;  %v455_v6 = vld [vmem:[#allocation5 + $0x20] sm:$0xff]  ;;  %v454_v8 = vld [vmem:[#allocation5 + $0x18] sm:$0xff] }
  0x19   :  { %v463_v7 = vld [vmem:[#allocation7 + $0x20] sm:$0xff]  ;;  %v462_v9 = vld [vmem:[#allocation7 + $0x18] sm:$0xff]  ;;  %v453_v10 = vld [vmem:[#allocation5 + $0x10] sm:$0xff] }
  0x1a   :  { %v461_v11 = vld [vmem:[#allocation7 + $0x10] sm:$0xff]  ;;  %v452_v12 = vld [vmem:[#allocation5 + $0x8] sm:$0xff]  ;;  %v451_v13 = vld [vmem:[#allocation5] sm:$0xff] }
  0x1b   :  { %163 = vmatpush.bf16.msra.mxu0 %v457_v1  ;;  %v96_v14 = vld [vmem:[#allocation2] sm:$0xf]  ;;  %v460_v15 = vld [vmem:[#allocation7 + $0x8] sm:$0xff]  ;;  %v459_v16 = vld [vmem:[#allocation7] sm:$0xff] }
  0x1c   :  { %243 = vmatpush.bf16.msra.mxu1 %v465_v3  ;;  %v474_v17 = vld [vmem:[#allocation8 + $0x38] sm:$0xff]  ;;  %v473_v18 = vld [vmem:[#allocation8 + $0x30] sm:$0xff]  ;;  %v472_v19 = vld [vmem:[#allocation8 + $0x28] sm:$0xff] }
  0x1d   :  { %322 = vmatpush.bf16.msra.mxu2 %v474_v17  ;;  %v471_v20 = vld [vmem:[#allocation8 + $0x20] sm:$0xff]  ;;  %v470_v21 = vld [vmem:[#allocation8 + $0x18] sm:$0xff]  ;;  %v469_v23 = vld [vmem:[#allocation8 + $0x10] sm:$0xff] }
  0x1e   :  { %v95_v22 = vld [vmem:[#allocation10] sm:$0xff]  ;;  %v468_v30 = vld [vmem:[#allocation8 + $0x8] sm:$0xff] }
  0x1f   :  { %164 = vmatpush.bf16.msra.mxu0 %v456_v4  ;;  %v113_v24 = vperm.slane %v95_v22, 0  ;;  %v467_v31 = vld [vmem:[#allocation8] sm:$0xff]  ;;  %v193_v32 = vperm.slane %v95_v22, 1  ;;  %v273_v38 = vperm.slane %v95_v22, 2 }
  0x20   :  { %244 = vmatpush.bf16.msra.mxu1 %v464_v5 }
  0x21   :  { %323 = vmatpush.bf16.msra.mxu2 %v473_v18 }
  0x23   :  { %165 = vmatpush.bf16.msra.mxu0 %v455_v6 }
  0x24   :  { %245 = vmatpush.bf16.msra.mxu1 %v463_v7 }
  0x25   :  { %324 = vmatpush.bf16.msra.mxu2 %v472_v19 }
  0x27   :  { %166 = vmatpush.bf16.msra.mxu0 %v454_v8 }
  0x28   :  { %246 = vmatpush.bf16.msra.mxu1 %v462_v9 }
  0x29   :  { %325 = vmatpush.bf16.msra.mxu2 %v471_v20 }
  0x2b   :  { %167 = vmatpush.bf16.msra.mxu0 %v453_v10 }
  0x2c   :  { %247 = vmatpush.bf16.msra.mxu1 %v461_v11 }
  0x2d   :  { %326 = vmatpush.bf16.msra.mxu2 %v470_v21 }
  0x2f   :  { %168 = vmatpush.bf16.msra.mxu0 %v452_v12 }
  0x30   :  { %248 = vmatpush.bf16.msra.mxu1 %v460_v15 }
  0x31   :  { %327 = vmatpush.bf16.msra.mxu2 %v469_v23 }
  0x33   :  { %169 = vmatpush.bf16.msra.mxu0 %v451_v13 }
  0x34   :  { %249 = vmatpush.bf16.msra.mxu1 %v459_v16 }
  0x35   :  { %328 = vmatpush.bf16.msra.mxu2 %v468_v30 }
  0x36   :  { %170 = vmatmul.bf16.vlgmr.msra.gmra.mxu0 %v96_v14 }
  0x39   :  { %329 = vmatpush.bf16.msra.mxu2 %v467_v31 }
  0xb3   :  { %v171_v25 = vpop.f32.mrf.mxu0 }
  0xb4   :  { %v172_v26 = vadd.f32 %v171_v25, %v113_v24 }
  0xb6   :  { %v175_v27 = vmax.f32 %v172_v26, 0.0 }
  0xb8   :  { %v176_v28 = vpack.c.bf16 %v175_v27, %v175_v27 }
  0xba   :  { %250 = vmatmul.bf16.vlgmr.msra.gmra.mxu1 %v176_v28 }
  0xbb   :  { %v173_v29 = vpop.f32.mrf.mxu0 }
 0x137   :  { %v251_v33 = vpop.f32.mrf.mxu1 }
 0x138   :  { %v252_v34 = vadd.f32 %v251_v33, %v193_v32 }
 0x13a   :  { %v255_v35 = vmax.f32 %v252_v34, 0.0 }
 0x13c   :  { %v256_v36 = vpack.c.bf16 %v255_v35, %v255_v35 }
 0x13e   :  { %330 = vmatmul.bf16.vlgmr.msra.gmra.mxu2 %v256_v36 }
 0x13f   :  { %v253_v37 = vpop.f32.mrf.mxu1 }
 0x1c1   :  { %v331_v39 = vpop.f32.mrf.mxu2 }
 0x1c2   :  { %v332_v40 = vadd.f32 %v331_v39, %v273_v38 }
 0x1c4   :  { %335 = vst [vmem:[#allocation11] sm:$0xff] %v332_v40 }
 0x1c5   :  { %346 = dma.vmem_to_hbm [thread:$0]  %s342_s4, 128, %s344_s19, [#allocation4]  }
 0x1c9   :  { %v333_v41 = vpop.f32.mrf.mxu2 }
 0x1ca   :  { %633 = dma.done.wait [#allocation4], 128  }
 0x1cb   :  { %634 = vsyncadd [#allocation4], 4294967168 }
 0x1cc   :  { %351 = vsyncpa [#allocation3], 1 }
 0x1cd   :  { %352 = vsyncpa [#allocation6], 1 }
 0x1ce   :  { %353 = vsyncpa [#allocation9], 1 }
 0x1cf   :  { %354 = vsyncpa [#allocation4], 1 }

</bundles_post_ra>
